<compile_context>
chip_gen: v7x
topology: tpu7x:2x2x1
jax: 0.10.0
libtpu: 0.0.40
codegen_flags: <defaults>
</compile_context>

<pallas_src>
import jax
import jax.numpy as jnp
from jax.experimental import pallas as pl
from jax.experimental.pallas import tpu as pltpu


def _pick_tile(S):
    """Largest tile size (multiple of 8, <= 256) that divides S."""
    for tq in (256, 128, 64, 32, 16, 8):
        if S % tq == 0:
            return tq
    return S  # fallback (toy shapes); production S should be a multiple of 8


def _make_kernel(S, TQ, T, eps):
    def kernel(ids_ref,                    # SMEM scalar-prefetch: (B*S,) int32 token ids
               tt_ref,                     # VMEM (TQ, 1)  int32 token-type ids for this tile
               pos_ref,                    # VMEM (TQ, H)  contiguous position-embedding rows
               typ_ref,                    # VMEM (T, H)   resident token-type table
               gamma_ref, beta_ref,        # VMEM (1, H)   LayerNorm params (resident)
               tok_hbm,                    # HBM  (V, H)   token-embedding table (pl.ANY)
               out_ref,                    # VMEM (TQ, H)  output tile
               tok_buf,                    # VMEM scratch (TQ, H) gathered token rows
               sem):                       # DMA semaphore ()
        b = pl.program_id(0)
        s = pl.program_id(1)
        base = b * S + s * TQ

        # Issue all TQ random-row gathers up front (deep in-flight buffering).
        @pl.loop(0, TQ)
        def _issue(r):
            row = ids_ref[base + r]
            pltpu.make_async_copy(tok_hbm.at[row], tok_buf.at[r], sem).start()

        # Retire all TQ copies (each wait accounts for one row's bytes).
        @pl.loop(0, TQ)
        def _drain(r):
            pltpu.make_async_copy(tok_hbm.at[0], tok_buf.at[r], sem).wait()

        tok = tok_buf[...].astype(jnp.float32)          # (TQ, H)
        pos = pos_ref[...].astype(jnp.float32)          # (TQ, H)
        tt = tt_ref[...]                                 # (TQ, 1) int32

        # Token-type embedding: table is VMEM-resident; select rows on the VPU.
        typ = jnp.zeros_like(tok)
        for t in range(T):                               # T is static & tiny (2 for BERT)
            row_t = typ_ref[t, :].astype(jnp.float32)    # (H,)
            typ = typ + jnp.where(tt == t, row_t[None, :], 0.0)

        # LayerNorm over the hidden dim, f32 math, eps = 1e-12 (matches nn.LayerNorm).
        e = tok + pos + typ
        mu = jnp.mean(e, axis=-1, keepdims=True)
        d = e - mu
        var = jnp.mean(d * d, axis=-1, keepdims=True)
        y = d * jax.lax.rsqrt(var + eps)
        y = y * gamma_ref[...].astype(jnp.float32) + beta_ref[...].astype(jnp.float32)
        out_ref[...] = y.astype(out_ref.dtype)

    return kernel


def bert_embeddings_pallas(input_ids, token_emb, pos_emb, type_emb, gamma, beta,
                           token_type_ids=None, position_ids=None):
    B, S = input_ids.shape
    V, H = token_emb.shape
    P = pos_emb.shape[0]
    T = type_emb.shape[0]

    if token_type_ids is None:
        token_type_ids = jnp.zeros_like(input_ids)

    TQ = _pick_tile(S)
    n_tiles = S // TQ

    ids_flat = input_ids.reshape(-1).astype(jnp.int32)              # (B*S,) -> SMEM
    tt2 = token_type_ids.reshape(-1, 1).astype(jnp.int32)           # (B*S, 1)
    gamma2 = gamma.reshape(1, H)
    beta2 = beta.reshape(1, H)

    if position_ids is None:
        # Default: position_ids == arange(S) -> contiguous tiles straight from the table.
        pos_src = pos_emb                                            # (P, H)
        pos_map = lambda b, s, ids: (s, 0)
    else:
        # Rare custom-position path: pre-gather once (XLA) and stream contiguously.
        pos_b = jnp.broadcast_to(position_ids.astype(jnp.int32), (B, S))
        pos_src = pos_emb[pos_b].reshape(B * S, H)
        pos_map = lambda b, s, ids: (b * n_tiles + s, 0)

    kernel = _make_kernel(S=S, TQ=TQ, T=T, eps=1e-12)

    grid_spec = pltpu.PrefetchScalarGridSpec(
        num_scalar_prefetch=1,
        grid=(B, n_tiles),
        in_specs=[
            pl.BlockSpec((TQ, 1), lambda b, s, ids: (b * n_tiles + s, 0)),  # token-type ids
            pl.BlockSpec((TQ, H), pos_map),                                  # position rows
            pl.BlockSpec((T, H), lambda b, s, ids: (0, 0)),                  # type table (resident)
            pl.BlockSpec((1, H), lambda b, s, ids: (0, 0)),                  # gamma (resident)
            pl.BlockSpec((1, H), lambda b, s, ids: (0, 0)),                  # beta (resident)
            pl.BlockSpec(memory_space=pl.ANY),                               # token table, HBM
        ],
        out_specs=pl.BlockSpec((None, TQ, H), lambda b, s, ids: (b, s, 0)),
        scratch_shapes=[
            pltpu.VMEM((TQ, H), token_emb.dtype),   # gathered token rows
            pltpu.SemaphoreType.DMA(()),            # shared DMA completion semaphore
        ],
    )

    out = pl.pallas_call(
        kernel,
        grid_spec=grid_spec,
        out_shape=jax.ShapeDtypeStruct((B, S, H), token_emb.dtype),
        compiler_params=pltpu.CompilerParams(
            dimension_semantics=("parallel", "parallel"),
            vmem_limit_bytes=32 * 1024 * 1024,      # safe on v5e/v6e/v7x; tiles are a few MB
        ),
    )(ids_flat, tt2, pos_src, type_emb, gamma2, beta2, token_emb)

    return out


# ----------------------- pure-JAX reference (sanity check) -------------------
def bert_embeddings_ref(input_ids, token_emb, pos_emb, type_emb, gamma, beta,
                        token_type_ids=None, position_ids=None):
    B, S = input_ids.shape
    if token_type_ids is None:
        token_type_ids = jnp.zeros_like(input_ids)
    if position_ids is None:
        position_ids = jnp.broadcast_to(jnp.arange(S)[None, :], (B, S))
    e = token_emb[input_ids] + pos_emb[position_ids] + type_emb[token_type_ids]
    mu = jnp.mean(e, axis=-1, keepdims=True)
    var = jnp.mean((e - mu) ** 2, axis=-1, keepdims=True)
    return (e - mu) * jax.lax.rsqrt(var + 1e-12) * gamma + beta


if __name__ == "__main__":
    B, S, H = 2, 8, 32
    VOCAB, MAX_POS, TYPE_VOCAB = 100, 64, 2

    key = jax.random.PRNGKey(0)
    k_ids, k_tt, k_tok, k_pos, k_typ = jax.random.split(key, 5)

    input_ids = jax.random.randint(k_ids, (B, S), 0, VOCAB, dtype=jnp.int32)
    token_type_ids = jax.random.randint(k_tt, (B, S), 0, TYPE_VOCAB, dtype=jnp.int32)

    token_emb = jax.random.normal(k_tok, (VOCAB, H), jnp.float32) * 0.02
    pos_emb = jax.random.normal(k_pos, (MAX_POS, H), jnp.float32) * 0.02
    type_emb = jax.random.normal(k_typ, (TYPE_VOCAB, H), jnp.float32) * 0.02
    gamma = jnp.ones((H,), jnp.float32)
    beta = jnp.zeros((H,), jnp.float32)

    out = bert_embeddings_pallas(input_ids, token_emb, pos_emb, type_emb,
                                 gamma, beta, token_type_ids=token_type_ids)
    out = jax.block_until_ready(out)

    ref = bert_embeddings_ref(input_ids, token_emb, pos_emb, type_emb,
                              gamma, beta, token_type_ids=token_type_ids)
    assert out.shape == (B, S, H)
    assert jnp.allclose(out, ref, atol=1e-4, rtol=1e-4)

    print("KERNEL_OK")
</pallas_src>

<mosaic_0001>
module attributes {stable_mosaic.version = 11 : i64} {
  func.func @kernel(%arg0: i32, %arg1: i32, %arg2: memref<16xi32, #tpu.memory_space<smem>>, %arg3: memref<8x1xi32, #tpu.memory_space<vmem>>, %arg4: memref<8x32xf32, #tpu.memory_space<vmem>>, %arg5: memref<2x32xf32, #tpu.memory_space<vmem>>, %arg6: memref<1x32xf32, #tpu.memory_space<vmem>>, %arg7: memref<1x32xf32, #tpu.memory_space<vmem>>, %arg8: memref<100x32xf32, #tpu.memory_space<any>>, %arg9: memref<1x8x32xf32, #tpu.memory_space<vmem>>, %arg10: memref<8x32xf32, #tpu.memory_space<vmem>>, %arg11: memref<!tpu.dma_semaphore, #tpu.memory_space<semaphore_mem>>) attributes {dimension_semantics = [#tpu.dimension_semantics<parallel>, #tpu.dimension_semantics<parallel>], iteration_bounds = array<i64: 2, 1>, scalar_prefetch = 1 : i64, scratch_operands = 2 : i64, tpu.core_type = #tpu.core_type<tc>, window_params = [{transform_indices = @transform_0, window_bounds = array<i64: 8, 1>}, {transform_indices = @transform_1, window_bounds = array<i64: 8, 32>}, {pipeline_mode = #tpu.pipeline_mode<synchronous>, transform_indices = @transform_2, window_bounds = array<i64: 2, 32>}, {pipeline_mode = #tpu.pipeline_mode<synchronous>, transform_indices = @transform_3, window_bounds = array<i64: 1, 32>}, {pipeline_mode = #tpu.pipeline_mode<synchronous>, transform_indices = @transform_4, window_bounds = array<i64: 1, 32>}, {}, {transform_indices = @transform_6, window_bounds = array<i64: 1, 8, 32>}]} {
    %c8_i32 = arith.constant 8 : i32
    %0 = arith.muli %arg0, %c8_i32 : i32
    %c8_i32_0 = arith.constant 8 : i32
    %1 = arith.muli %arg1, %c8_i32_0 : i32
    %2 = arith.addi %0, %1 : i32
    %c0_i32 = arith.constant 0 : i32
    %c8_i32_1 = arith.constant 8 : i32
    %3 = arith.addi %c0_i32, %c8_i32_1 : i32
    %c1_i32 = arith.constant 1 : i32
    scf.for %arg12 = %c0_i32 to %3 step %c1_i32  : i32 {
      %c1_i32_31 = arith.constant 1 : i32
      %60 = arith.muli %arg12, %c1_i32_31 : i32
      %c0_i32_32 = arith.constant 0 : i32
      %61 = arith.addi %c0_i32_32, %60 : i32
      %62 = arith.addi %2, %61 : i32
      %63 = arith.index_cast %62 : i32 to index
      %64 = memref.load %arg2[%63] : memref<16xi32, #tpu.memory_space<smem>>
      %c0_i32_33 = arith.constant 0 : i32
      %65 = tpu.memref_slice %arg8[%64, %c0_i32_33] : memref<100x32xf32, #tpu.memory_space<any>> -> memref<1x32xf32, #tpu.memory_space<any>>
      %66 = tpu.memref_squeeze %65 : memref<1x32xf32, #tpu.memory_space<any>> -> memref<32xf32, #tpu.memory_space<any>>
      %c0_i32_34 = arith.constant 0 : i32
      %67 = tpu.memref_slice %arg10[%61, %c0_i32_34] : memref<8x32xf32, #tpu.memory_space<vmem>> -> memref<1x32xf32, #tpu.memory_space<vmem>>
      %68 = tpu.memref_squeeze %67 : memref<1x32xf32, #tpu.memory_space<vmem>> -> memref<32xf32, #tpu.memory_space<vmem>>
      tpu.enqueue_dma source(%66 : memref<32xf32, #tpu.memory_space<any>>) target(%68 : memref<32xf32, #tpu.memory_space<vmem>>) target_semaphore(%arg11 : memref<!tpu.dma_semaphore, #tpu.memory_space<semaphore_mem>>)
    }
    %c8_i32_2 = arith.constant 8 : i32
    %c0_i32_3 = arith.constant 0 : i32
    %c8_i32_4 = arith.constant 8 : i32
    %4 = arith.addi %c0_i32_3, %c8_i32_4 : i32
    %c1_i32_5 = arith.constant 1 : i32
    scf.for %arg12 = %c0_i32_3 to %4 step %c1_i32_5  : i32 {
      %c1_i32_31 = arith.constant 1 : i32
      %60 = arith.muli %arg12, %c1_i32_31 : i32
      %c0_i32_32 = arith.constant 0 : i32
      %61 = arith.addi %c0_i32_32, %60 : i32
      %c0_i32_33 = arith.constant 0 : i32
      %c0_i32_34 = arith.constant 0 : i32
      %62 = tpu.memref_slice %arg8[%c0_i32_33, %c0_i32_34] : memref<100x32xf32, #tpu.memory_space<any>> -> memref<1x32xf32, #tpu.memory_space<any>>
      %63 = tpu.memref_squeeze %62 : memref<1x32xf32, #tpu.memory_space<any>> -> memref<32xf32, #tpu.memory_space<any>>
      %c0_i32_35 = arith.constant 0 : i32
      %64 = tpu.memref_slice %arg10[%61, %c0_i32_35] : memref<8x32xf32, #tpu.memory_space<vmem>> -> memref<1x32xf32, #tpu.memory_space<vmem>>
      %65 = tpu.memref_squeeze %64 : memref<1x32xf32, #tpu.memory_space<vmem>> -> memref<32xf32, #tpu.memory_space<vmem>>
      tpu.wait_dma2 semaphore(%arg11 : memref<!tpu.dma_semaphore, #tpu.memory_space<semaphore_mem>>) src(%63 : memref<32xf32, #tpu.memory_space<any>>) dst(%65 : memref<32xf32, #tpu.memory_space<vmem>>)
    }
    %c8_i32_6 = arith.constant 8 : i32
    %c0 = arith.constant 0 : index
    %c0_7 = arith.constant 0 : index
    %5 = vector.load %arg10[%c0, %c0_7] : memref<8x32xf32, #tpu.memory_space<vmem>>, vector<8x32xf32>
    %c0_8 = arith.constant 0 : index
    %c0_9 = arith.constant 0 : index
    %6 = vector.load %arg4[%c0_8, %c0_9] : memref<8x32xf32, #tpu.memory_space<vmem>>, vector<8x32xf32>
    %c0_10 = arith.constant 0 : index
    %c0_11 = arith.constant 0 : index
    %7 = vector.load %arg3[%c0_10, %c0_11] : memref<8x1xi32, #tpu.memory_space<vmem>>, vector<8x1xi32>
    %cst = arith.constant 0.000000e+00 : f32
    %8 = vector.broadcast %cst : f32 to vector<8x32xf32>
    %c0_12 = arith.constant 0 : index
    %c0_13 = arith.constant 0 : index
    %9 = vector.load %arg5[%c0_12, %c0_13] : memref<2x32xf32, #tpu.memory_space<vmem>>, vector<1x32xf32>
    %10 = vector.shape_cast %9 : vector<1x32xf32> to vector<32xf32>
    %c0_i32_14 = arith.constant 0 : i32
    %11 = vector.broadcast %c0_i32_14 : i32 to vector<8x1xi32>
    %12 = arith.cmpi eq, %7, %11 : vector<8x1xi32>
    %13 = vector.shape_cast %10 : vector<32xf32> to vector<1x32xf32>
    %cst_15 = arith.constant 0.000000e+00 : f32
    %14 = vector.shape_cast %12 : vector<8x1xi1> to vector<8x1xi1>
    %15 = vector.broadcast %14 : vector<8x1xi1> to vector<8x32xi1>
    %16 = vector.shape_cast %13 : vector<1x32xf32> to vector<1x32xf32>
    %17 = vector.broadcast %16 : vector<1x32xf32> to vector<8x32xf32>
    %18 = vector.broadcast %cst_15 : f32 to vector<8x32xf32>
    %19 = arith.select %15, %17, %18 : vector<8x32xi1>, vector<8x32xf32>
    %20 = arith.addf %8, %19 : vector<8x32xf32>
    %c1 = arith.constant 1 : index
    %c0_16 = arith.constant 0 : index
    %21 = vector.load %arg5[%c1, %c0_16] : memref<2x32xf32, #tpu.memory_space<vmem>>, vector<1x32xf32>
    %22 = vector.shape_cast %21 : vector<1x32xf32> to vector<32xf32>
    %c1_i32_17 = arith.constant 1 : i32
    %23 = vector.broadcast %c1_i32_17 : i32 to vector<8x1xi32>
    %24 = arith.cmpi eq, %7, %23 : vector<8x1xi32>
    %25 = vector.shape_cast %22 : vector<32xf32> to vector<1x32xf32>
    %cst_18 = arith.constant 0.000000e+00 : f32
    %26 = vector.shape_cast %24 : vector<8x1xi1> to vector<8x1xi1>
    %27 = vector.broadcast %26 : vector<8x1xi1> to vector<8x32xi1>
    %28 = vector.shape_cast %25 : vector<1x32xf32> to vector<1x32xf32>
    %29 = vector.broadcast %28 : vector<1x32xf32> to vector<8x32xf32>
    %30 = vector.broadcast %cst_18 : f32 to vector<8x32xf32>
    %31 = arith.select %27, %29, %30 : vector<8x32xi1>, vector<8x32xf32>
    %32 = arith.addf %20, %31 : vector<8x32xf32>
    %33 = arith.addf %5, %6 : vector<8x32xf32>
    %34 = arith.addf %33, %32 : vector<8x32xf32>
    %cst_19 = arith.constant dense<0.000000e+00> : vector<8xf32>
    %35 = vector.multi_reduction <add>, %34, %cst_19 [1] : vector<8x32xf32> to vector<8xf32>
    %36 = vector.shape_cast %35 : vector<8xf32> to vector<8x1xf32>
    %cst_20 = arith.constant 3.200000e+01 : f32
    %37 = vector.broadcast %cst_20 : f32 to vector<8x1xf32>
    %38 = arith.divf %36, %37 : vector<8x1xf32>
    %39 = vector.broadcast %38 : vector<8x1xf32> to vector<8x32xf32>
    %40 = arith.subf %34, %39 : vector<8x32xf32>
    %41 = arith.mulf %40, %40 : vector<8x32xf32>
    %cst_21 = arith.constant dense<0.000000e+00> : vector<8xf32>
    %42 = vector.multi_reduction <add>, %41, %cst_21 [1] : vector<8x32xf32> to vector<8xf32>
    %43 = vector.shape_cast %42 : vector<8xf32> to vector<8x1xf32>
    %cst_22 = arith.constant 3.200000e+01 : f32
    %44 = vector.broadcast %cst_22 : f32 to vector<8x1xf32>
    %45 = arith.divf %43, %44 : vector<8x1xf32>
    %cst_23 = arith.constant 9.99999996E-13 : f32
    %46 = vector.broadcast %cst_23 : f32 to vector<8x1xf32>
    %47 = arith.addf %45, %46 : vector<8x1xf32>
    %48 = math.rsqrt %47 : vector<8x1xf32>
    %49 = vector.broadcast %48 : vector<8x1xf32> to vector<8x32xf32>
    %50 = arith.mulf %40, %49 : vector<8x32xf32>
    %c0_24 = arith.constant 0 : index
    %c0_25 = arith.constant 0 : index
    %51 = vector.load %arg6[%c0_24, %c0_25] : memref<1x32xf32, #tpu.memory_space<vmem>>, vector<1x32xf32>
    %52 = vector.broadcast %51 : vector<1x32xf32> to vector<8x32xf32>
    %53 = arith.mulf %50, %52 : vector<8x32xf32>
    %c0_26 = arith.constant 0 : index
    %c0_27 = arith.constant 0 : index
    %54 = vector.load %arg7[%c0_26, %c0_27] : memref<1x32xf32, #tpu.memory_space<vmem>>, vector<1x32xf32>
    %55 = vector.broadcast %54 : vector<1x32xf32> to vector<8x32xf32>
    %56 = arith.addf %53, %55 : vector<8x32xf32>
    %c0_28 = arith.constant 0 : index
    %c0_29 = arith.constant 0 : index
    %c0_30 = arith.constant 0 : index
    %57 = vector.load %arg9[%c0_28, %c0_29, %c0_30] : memref<1x8x32xf32, #tpu.memory_space<vmem>>, vector<1x8x32xf32>
    %58 = vector.shape_cast %57 : vector<1x8x32xf32> to vector<8x32xf32>
    %59 = vector.shape_cast %56 : vector<8x32xf32> to vector<1x8x32xf32>
    tpu.vector_store %arg9[%c0_28, %c0_29, %c0_30], %59 {strides = array<i32>} : memref<1x8x32xf32, #tpu.memory_space<vmem>>, vector<1x8x32xf32>,
    return
  }
  func.func @transform_0(%arg0: i32, %arg1: i32, %arg2: memref<16xi32, #tpu.memory_space<smem>>) -> (i32, i32) {
    %c1_i32 = arith.constant 1 : i32
    %0 = arith.muli %arg0, %c1_i32 : i32
    %1 = arith.addi %0, %arg1 : i32
    %c0_i32 = arith.constant 0 : i32
    %c0_i32_0 = arith.constant 0 : i32
    return %1, %c0_i32 : i32, i32
  }
  func.func @transform_1(%arg0: i32, %arg1: i32, %arg2: memref<16xi32, #tpu.memory_space<smem>>) -> (i32, i32) {
    %c0_i32 = arith.constant 0 : i32
    %c0_i32_0 = arith.constant 0 : i32
    return %arg1, %c0_i32 : i32, i32
  }
  func.func @transform_2(%arg0: i32, %arg1: i32, %arg2: memref<16xi32, #tpu.memory_space<smem>>) -> (i32, i32) {
    %c0_i32 = arith.constant 0 : i32
    %c0_i32_0 = arith.constant 0 : i32
    %c0_i32_1 = arith.constant 0 : i32
    return %c0_i32, %c0_i32_0 : i32, i32
  }
  func.func @transform_3(%arg0: i32, %arg1: i32, %arg2: memref<16xi32, #tpu.memory_space<smem>>) -> (i32, i32) {
    %c0_i32 = arith.constant 0 : i32
    %c0_i32_0 = arith.constant 0 : i32
    %c0_i32_1 = arith.constant 0 : i32
    return %c0_i32, %c0_i32_0 : i32, i32
  }
  func.func @transform_4(%arg0: i32, %arg1: i32, %arg2: memref<16xi32, #tpu.memory_space<smem>>) -> (i32, i32) {
    %c0_i32 = arith.constant 0 : i32
    %c0_i32_0 = arith.constant 0 : i32
    %c0_i32_1 = arith.constant 0 : i32
    return %c0_i32, %c0_i32_0 : i32, i32
  }
  func.func @transform_6(%arg0: i32, %arg1: i32, %arg2: memref<16xi32, #tpu.memory_space<smem>>) -> (i32, i32, i32) {
    %c0_i32 = arith.constant 0 : i32
    %c0_i32_0 = arith.constant 0 : i32
    return %arg0, %arg1, %c0_i32 : i32, i32, i32
  }
}

</mosaic_0001>

<bundles_post_ra>
// kernel: tpu_custom_call.1
= control target key start
LH: loop header
LB: loop body
LE: loop exit
PB: predicated region body
PF: predicated region fallthrough
CT: control target
= control target key end

     0   :  { %s917_s0 = inlined_call_operand.vmem [shape: s32[16], index: 0, kind: input, shape index: {}]   ;;  %s918_s1 = inlined_call_operand.vmem [shape: s32[16,1], index: 1, kind: input, shape index: {}]   ;;  %s919_s2 = inlined_call_operand.vmem [shape: f32[64,32], index: 2, kind: input, shape index: {}]   ;;  %s920_s3 = inlined_call_operand.vmem [shape: f32[2,32], index: 3, kind: input, shape index: {}]   ;;  %s921_s4 = inlined_call_operand.vmem [shape: f32[1,32], index: 4, kind: input, shape index: {}]   ;;  %s922_s5 = inlined_call_operand.vmem [shape: f32[1,32], index: 5, kind: input, shape index: {}]   ;;  %s923_s6 = inlined_call_operand.vmem [shape: f32[100,32], index: 6, kind: input, shape index: {}]   ;;  %s924_s7 = inlined_call_operand.hbm [shape: f32[2,8,32], index: 7, kind: output, shape index: {}]  }
   0x1   :  { %s12_s26 = sshll.u32 %s917_s0, 4  ;;  %s13_s26 = int_to_ptr.vmem [resolvable:$true] %s12_s26 }
   0x2   :  { %s614_s27 = scalar_lea.vmem %s13_s26, 16  ;;  %p619_p1 = scmp.lt.s32.totalorder %s13_s26, %s13_s26 }
   0x3   :  { %p615_p0 = scmp.ne.s32.totalorder %s13_s26, %s614_s27  ;;  %p620_p2 = scmp.lt.s32.totalorder %s614_s27, %s614_s27 }
   0x5   :  { %p621_p3 = por %p620_p2, %p619_p1 }
   0x7   :  { %p622_p4 = pnand %p621_p3, %p615_p0 }
   0x9   :  { %625 = shalt.err (!%p622_p4)  }
   0xa   :  { %s726_s28 = smov [#allocation5]  }
   0xb   :  { %15 = dma.vmem_to_smem %s13_s26, 16, %s726_s28, [#allocation4] }
   0xc   :  { %686 = dma.done.wait [#allocation4], 16 }
   0xd   :  { %687 = vsyncadd [#allocation4], 4294967280 }
   0xe   :  { %17 = sfence }
   0xf   :  { %18 = vsyncpa [#allocation7], 0 }
  0x10   :  { %20 = vsyncpa [#allocation7 + $0x1], 0  ;;  %s772_s29 = smov 0   ;;  %s774_s30 = smov 0  }
  0x11   :  { %s776_s0 = smov 0   ;;  %s778_s8 = smov 0  }
  0x12   :  { %s780_s9 = smov 0   ;;  %s782_s10 = smov 0  }
  0x13 LB: > { %s520_s11 = sadd.s32 4294967295, %s716_s10   ;;  %s521_s12 = sadd.s32 4294967294, %s716_s10   ;;  %s716_s10 = sphi %s782_s10, %s26_s10   ;;  %s712_s9 = sphi %s780_s9, %s936_s9   ;;  %s708_s8 = sphi %s778_s8, %s935_s8   ;;  %s704_s0 = sphi %s776_s0, %s934_s0   ;;  %s700_s30 = sphi %s774_s30, %s933_s30   ;;  %s696_s29 = sphi %s772_s29, %s932_s29  }
  0x14   : > { %s38_s13 = sadd.s32 1, %s712_s9  ;;  %s164_s14 = sadd.s32 1, %s704_s0 }
  0x15   : > { %p40_p5 = scmp.ge.s32.totalorder %s38_s13, 2  ;;  %p174_p6 = scmp.ne.s32.totalorder %s704_s0, %s700_s30 }
  0x16   : > { %p175_p7 = scmp.eq.s32.totalorder %s520_s11, 1  ;;  %p180_p8 = scmp.ne.s32.totalorder %s700_s30, %s696_s29 }
  0x17   : > { %s938_s13 = smov (%p40_p5, %s38_s13), 0  ;;  %p181_p10 = scmp.eq.s32.totalorder %s521_s12, 1 }
  0x18   : > { %927 = sst [smem:[#allocation12_spill]] %s938_s13  ;;  %p812_p9 = por %p175_p7, %p174_p6 }
  0x19   : > { %s159_s16 = ssub.s32 %s712_s9, %s938_s13  ;;  %p525_p11 = scmp.ge.s32.totalorder %s716_s10, 1 }
  0x1a   : > { %p162_p12 = scmp.eq.s32.totalorder %s159_s16, 0  ;;  %p819_p13 = por %p181_p10, %p180_p8 }
  0x1b   : > { %p224_p0 = scmp.lt.s32.totalorder %s716_s10, 3 }
  0x1c   : > { %s825_s18 = scalar_select %p162_p12, %s704_s0, %s164_s14  }
  0x1d   : > { %p225_p1 = pnand %p525_p11, %p224_p0 }
  0x1e   : > { %s925_s19 = sand.u32 (!%p225_p1), 1, %s700_s30   ;;  %p257_p2 = scmp.lt.s32.totalorder (!%p225_p1), %s708_s8, 1 }
  0x1f   : > { %228 = sbr.rel (%p225_p1) target bundleno = 533 (0x215), region = 40  ;;  %s831_s20 = sshll.u32 (!%p225_p1), %s925_s19, 3 }
  0x20   : > { %s528_s21 = sshll.u32 (!%p225_p1), %s708_s8, 3  ;;  %s255_s27 = scalar_lea.vmem (!%p225_p1), [#allocation6], %s831_s20 }
  0x21   : > { %s718_s28 = smov (!%p225_p1), 0  }
  0x26   : > { %s258_s22 = scalar_select %p257_p2, %s708_s8, 1 }
  0x28   : > { %s527_s23 = sshll.u32 %s258_s22, 3 }
  0x29   : > { %s260_s26 = scalar_lea.vmem %s918_s1, %s527_s23 }
  0x2a LB: >> { %s275_s11 = sadd.s32 %s720_s28, %s528_s21  ;;  %s278_s13 = scalar_lea.vmem [#allocation2], %s720_s28  ;;  %s720_s28 = sphi %s718_s28, %s274_s28  }
  0x2b   : >> { %s276_s12 = sld [smem:[#allocation5 + %s275_s11]] }
  0x31   : >> { %s277_s19 = scalar_lea.vmem %s923_s6, %s276_s12 }
  0x32   : >> { %v296_v0 = vld [vmem:[%s277_s19] sm:$0x1] }
  0x33   : >> { %297 = vst [vmem:[%s278_s13] sm:$0x1] %v296_v0 }
  0x34   : >> { %322 = vsyncadd [#allocation3], 16  ;;  %s274_s28 = sadd.s32 1, %s720_s28  }
  0x35   : >> { %p271_p3 = scmp.ge.s32.totalorder %s274_s28, 8  }
  0x36   : > { %s722_s22 = smov (%p271_p3), 0  }
  0x37   : > { %273 = sbr.rel (!%p271_p3) target bundleno = 42 (0x2a), region = 134 }
  0x3e LB: >> { %688 = dma.done.wait [#allocation3], 16  ;;  %s724_s22 = sphi %s722_s22, %s328_s22  }
  0x3f   : >> { %689 = vsyncadd [#allocation3], 4294967280  ;;  %s328_s22 = sadd.s32 1, %s724_s22  }
  0x40   : >> { %p325_p4 = scmp.ge.s32.totalorder %s328_s22, 8  }
  0x41   : > { %v333_v1 = vld [vmem:[%s260_s26] sm:$0xff] (%p325_p4)  ;;  %v727_v2 = vmov (%p325_p4), 0   ;;  %vm362_vm4 = vcmask (%p325_p4), 261120   ;;  %s534_s14 = sshll.u32 (%p325_p4), %s708_s8, 7  ;;  %s409_s16 = sshll.u32 (%p325_p4), %s255_s27, 4  ;;  %s867_s16 = int_to_ptr.vmem [resolvable:$true] %s409_s16 }
  0x42   : > { %327 = sbr.rel (!%p325_p4) target bundleno = 62 (0x3e), region = 145  ;;  %611 = vset.pattern.permute.xlu0 (%p325_p4), %v727_v2  ;;  %vm335_vm0 = vcmp.eq.s32.totalorder (%p325_p4), %v333_v1, 0  ;;  %vm348_vm1 = vcmp.eq.s32.totalorder (%p325_p4), %v333_v1, 1  ;;  %v331_v6 = vld [vmem:[#allocation2] sm:$0xff] (%p325_p4)  ;;  %s865_s19 = scalar_lea.hbm (%p325_p4), %s924_s7, %s534_s14 }
  0x43   : > { %v336_v3 = vsel (%p325_p4), %vm335_vm0, 1, %v727_v2  ;;  %v349_v4 = vsel (%p325_p4), %vm348_vm1, 1, %v727_v2  ;;  %v332_v7 = vld [vmem:[%s919_s2] sm:$0xff] (%p325_p4)  ;;  %s930_s21 = sand.u32 (%p325_p4), 1, %s700_s30   ;;  %s626_s8 = scalar_lea.vmem (%p325_p4), %s867_s16, 128 }
  0x44   : > { %338 = vperm.xlu0 (%p325_p4), %611, %v336_v3   ;;  %v529_v8 = vld [vmem:[%s920_s3] ss:$0 sm:$0xff] (%p325_p4)  ;;  %v530_v9 = vld [vmem:[%s920_s3 + $0x1] ss:$0 sm:$0xff] (%p325_p4)  ;;  %v360_v11 = vadd.f32 (%p325_p4), %v332_v7, %v331_v6  ;;  %s395_s23 = scalar_lea.sflag (%p325_p4), [#allocation7], %s930_s21  ;;  %p627_p5 = scmp.ne.s32.totalorder (%p325_p4), %s867_s16, %s626_s8 }
  0x45   : > { %v531_v26 = vld [vmem:[%s921_s4] ss:$0 sm:$0xff] (%p325_p4)  ;;  %s728_s24 = smov (%p325_p4), [#allocation6]  }
  0x46   : > { %v532_v28 = vld [vmem:[%s922_s5] ss:$0 sm:$0xff] (%p325_p4)  ;;  %p628_p6 = pnand (%p325_p4), %p627_p5, %p812_p9  ;;  %s630_s25 = sshll.u32 (%p325_p4), %s728_s24, 4  ;;  %s631_s25 = int_to_ptr.vmem [resolvable:$false] %s630_s25 }
  0x47   : > { %s632_s26 = scalar_lea.vmem (%p325_p4), %s631_s25, 256  ;;  %p633_p8 = scmp.lt.s32.totalorder (%p325_p4), %s867_s16, %s631_s25 }
  0x48   : > { %351 = vperm.xlu0 (%p325_p4), %611, %v349_v4   ;;  %p629_p7 = pneg (%p325_p4), %p628_p6  ;;  %p634_p10 = scmp.lt.s32.totalorder (%p325_p4), %s632_s26, %s626_s8 }
  0x4a   : > { %p635_p11 = por %p634_p10, %p633_p8 }
  0x4c   : > { %p636_p12 = pnand %p635_p11, %p629_p7 }
  0xc3   : > { %v339_v5 = vpop.permute.xlu0 %338 }
  0xc4   : > { %vm340_vm2 = vcmp.eq.s32.totalorder %v339_v5, 1 }
  0xc5   : > { %v345_v12 = vsel %vm340_vm2, %v529_v8, 0.0 }
  0xc7   : > { %v352_v10 = vpop.permute.xlu0 %351 }
  0xc8   : > { %vm353_vm3 = vcmp.eq.s32.totalorder %v352_v10, 1 }
  0xc9   : > { %v358_v13 = vsel %vm353_vm3, %v530_v9, 0.0 }
  0xca   : > { %v359_v14 = vadd.f32 %v358_v13, %v345_v12 }
  0xcc   : > { %v361_v15 = vadd.f32 %v360_v11, %v359_v14 }
  0xce   : > { %v363_v16 = vsel %vm362_vm4, %v361_v15, 0.0 }
  0xcf   : > { %364 = vadd.xlane.f32.xlu1 %v363_v16 }
 0x15c   : > { %v365_v17 = vpop.xlane.xlu1 %364 }
 0x15d   : > { %v367_v18 = vmul.f32 0.03125, %v365_v17 }
 0x15f   : > { %v368_v19 = vsub.f32 %v361_v15, %v367_v18 }
 0x161   : > { %v369_v20 = vmul.f32 %v368_v19, %v368_v19 }
 0x163   : > { %v370_v21 = vsel %vm362_vm4, %v369_v20, 0.0 }
 0x164   : > { %371 = vadd.xlane.f32.xlu1 %v370_v21 }
 0x1f1   : > { %v372_v22 = vpop.xlane.xlu1 %371 }
 0x1f2   : > { %v373_v23 = vmul.f32 0.03125, %v372_v22 }
 0x1f4   : > { %v374_v24 = vadd.f32 1e-12, %v373_v23 }
 0x1f6   : > { %612 = vrsqrt.f32 %v374_v24 }
 0x200   : > { %v613_v25 = vpop.eup %612 }
 0x201   : > { %v376_v27 = vmul.f32 %v613_v25, %v368_v19 }
 0x203   : > { %v384_v29 = vmul.f32 %v531_v26, %v376_v27 }
 0x205   : > { %v392_v30 = vadd.f32 %v532_v28, %v384_v29 }
 0x207   : > { %393 = vst.msk [vmem:[%s255_s27] sm:$0xff] %vm362_vm4, %v392_v30 }
 0x208   : > { %639 = shalt.err (!%p636_p12)
}
 0x209   : > { %s640_s20 = scalar_lea.hbm %s865_s19, 128  ;;  %s644_s11 = scalar_lea.hbm %s924_s7, 256 }
 0x20a   : > { %p641_p0 = scmp.ne.s32.totalorder %s865_s19, %s640_s20  ;;  %p645_p3 = scmp.lt.u32.totalorder %s865_s19, %s924_s7 }
 0x20b   : > { %p646_p4 = scmp.lt.u32.totalorder %s644_s11, %s640_s20  ;;  %p648_p6 = scmp.lt.u32.totalorder %s640_s20, %s865_s19 }
 0x20c   : > { %p642_p1 = pnand %p641_p0, %p812_p9 }
 0x20d   : > { %p647_p5 = por %p646_p4, %p645_p3 }
 0x20e   : > { %p643_p2 = pneg %p642_p1 }
 0x20f   : > { %p649_p7 = por %p648_p6, %p647_p5 }
 0x211   : > { %p650_p8 = pnand %p649_p7, %p643_p2 }
 0x213   : > { %653 = shalt.err (!%p650_p8)
}
 0x214   : > { %538 = dma.vmem_to_hbm [thread:$0]  (%p812_p9), %s867_s16, 128, %s865_s19, %s395_s23  }
 0x215 PF: > { %p544_p10 = scmp.ge.s32.totalorder %s716_s10, 2  ;;  %s421_s22 = sand.u32 1, %s696_s29  }
 0x216   : > { %s422_s13 = scalar_lea.sflag [#allocation7], %s421_s22 }
 0x217   : > { %p541_p11 = pnand %p544_p10, %p819_p13 }
 0x219   : > { %691 = dma.done.wait (!%p541_p11), %s422_s13, 128  }
 0x21a   : > { %693 = vsyncadd (!%p541_p11), %s422_s13, 4294967168  ;;  %s26_s10 = sadd.s32 1, %s716_s10   ;;  %s931_s15 = sld [smem:[#allocation12_spill]] }
 0x21b   : > { %p23_p12 = scmp.ge.s32.totalorder %s26_s10, 4   ;;  %s932_s29 = smov %s700_s30 }
 0x21c   : > { %s933_s30 = smov %s704_s0  ;;  %s934_s0 = smov %s825_s18 }
 0x21d   : > { %s935_s8 = smov %s712_s9  ;;  %25 = sbr.rel (!%p23_p12) target bundleno = 19 (0x13), region = 156 }
 0x220   : > { %s936_s9 = smov %s931_s15 }
 0x224   :  { %427 = vsyncpa [#allocation7], 1 }
 0x225   :  { %429 = vsyncpa [#allocation7 + $0x1], 1 }
 0x226   :  { %430 = vsyncmov [#allocation3] }
 0x229   :  { %s431_s17 = vpop.sfrf %430 }
 0x22a   :  { %p537_p9 = scmp.ne.s32.totalorder %s431_s17, 0 }
 0x22c   :  { %435 = shalt.err (%p537_p9)  }

</bundles_post_ra>
